<compile_context>
chip_gen: v7x
topology: tpu7x:2x2x1
jax: 0.10.0
libtpu: 0.0.40
codegen_flags: <defaults>
</compile_context>

<pallas_src>
import functools

import jax
import jax.numpy as jnp
from jax import lax
from jax.experimental import pallas as pl
from jax.experimental.pallas import tpu as pltpu

_NEG_BIG = -1e30  # finite "minus infinity": avoids inf - inf -> NaN in the online max


def _round_up(x, m):
    return (x + m - 1) // m * m


# ----------------------------------------------------------------------------
# Pallas kernel: one (tm, tn) tile of the supervised-contrastive loss
# ----------------------------------------------------------------------------
def _scc_tile_kernel(a_ref, ct_ref, alab_ref, clab_ref, o_ref,
                     m_scr, l_scr, sp_scr, spl_scr,
                     *, inv_temp, loss_scale, n_real):
    i = pl.program_id(0)          # anchor-row tile   (parallel)
    j = pl.program_id(1)          # contrast-col tile (arbitrary / reduction)
    tm = a_ref.shape[0]
    tn = ct_ref.shape[1]

    @pl.when(j == 0)
    def _init():
        m_scr[...] = jnp.full(m_scr.shape, _NEG_BIG, jnp.float32)
        l_scr[...] = jnp.zeros(l_scr.shape, jnp.float32)
        sp_scr[...] = jnp.zeros(sp_scr.shape, jnp.float32)
        spl_scr[...] = jnp.zeros(spl_scr.shape, jnp.float32)

    # logits tile: (A / T) @ Ct on the MXU.  1/T folded into the (tm, D) anchor
    # tile (tm*D multiplies) rather than dividing the (tm, tn) score tile.
    a = a_ref[...] * inv_temp
    s = jnp.dot(a, ct_ref[...], preferred_element_type=jnp.float32)   # (tm, tn)

    # self-contrast (global row == global col) and padded-column masking.
    rid = i * tm + lax.broadcasted_iota(jnp.int32, (tm, tn), 0)
    cid = j * tn + lax.broadcasted_iota(jnp.int32, (tm, tn), 1)
    invalid = (rid == cid) | (cid >= n_real)
    s = jnp.where(invalid, _NEG_BIG, s)

    # online softmax (running max / running sum of exp), per row.
    m_prev = m_scr[...]
    m_new = jnp.maximum(m_prev, jnp.max(s, axis=1, keepdims=True))
    alpha = jnp.exp(m_prev - m_new)
    p = jnp.exp(s - m_new)
    l_scr[...] = alpha * l_scr[...] + jnp.sum(p, axis=1, keepdims=True)
    m_scr[...] = m_new

    # positive-pair accumulators: same label, self/padding excluded.
    pos = ((alab_ref[...] == clab_ref[...]) & jnp.logical_not(invalid))
    pos = pos.astype(jnp.float32)
    sp_scr[...] += jnp.sum(pos, axis=1, keepdims=True)
    spl_scr[...] += jnp.sum(pos * s, axis=1, keepdims=True)

    @pl.when(j == pl.num_programs(1) - 1)
    def _finalize():
        # sum(pos * log_prob) = sum(pos * logit) - sum(pos) * logsumexp
        lse = m_scr[...] + jnp.log(l_scr[...])
        sp = sp_scr[...]
        # Guard rows with zero positive pairs (padded rows) instead of emitting
        # NaN like the raw torch math would; for real rows with n_views >= 2 the
        # guard never triggers.
        mlpp = (spl_scr[...] - sp * lse) / jnp.maximum(sp, 1.0)
        o_ref[...] = (-loss_scale) * mlpp


# ----------------------------------------------------------------------------
# Wrapper: pad/transpose to lane-dense slabs, launch the tiled kernel
# ----------------------------------------------------------------------------
def scc_contrast_loss(anchor, contrast, anchor_labels, contrast_labels, *,
                      temperature, base_temperature, tm_max=256, tn_max=1024):
    """Pallas equivalent of SCCLoss._contrast on row-major (anchor, contrast) slabs."""
    m_real, d = anchor.shape
    n_real = contrast.shape[0]

    d_pad = _round_up(d, 128)                      # full-lane feature loads
    tm = min(tm_max, _round_up(m_real, 8))
    tn = min(tn_max, _round_up(n_real, 128))
    m_pad = _round_up(m_real, tm)
    n_pad = _round_up(n_real, tn)

    a = jnp.zeros((m_pad, d_pad), jnp.float32)
    a = a.at[:m_real, :d].set(anchor.astype(jnp.float32))
    ct = jnp.zeros((d_pad, n_pad), jnp.float32)    # pre-transposed contrast [D, N]
    ct = ct.at[:d, :n_real].set(contrast.astype(jnp.float32).T)
    alab = jnp.full((m_pad, 1), -1, jnp.int32)
    alab = alab.at[:m_real, 0].set(anchor_labels.astype(jnp.int32))
    clab = jnp.full((1, n_pad), -2, jnp.int32)
    clab = clab.at[0, :n_real].set(contrast_labels.astype(jnp.int32))

    kernel = functools.partial(
        _scc_tile_kernel,
        inv_temp=1.0 / float(temperature),
        loss_scale=float(temperature) / float(base_temperature),
        n_real=n_real)

    row_loss = pl.pallas_call(
        kernel,
        out_shape=jax.ShapeDtypeStruct((m_pad, 1), jnp.float32),
        grid_spec=pltpu.PrefetchScalarGridSpec(
            num_scalar_prefetch=0,
            grid=(m_pad // tm, n_pad // tn),
            in_specs=[
                pl.BlockSpec((tm, d_pad), lambda i, j: (i, 0)),   # anchor tile
                pl.BlockSpec((d_pad, tn), lambda i, j: (0, j)),   # contrast^T tile
                pl.BlockSpec((tm, 1), lambda i, j: (i, 0)),       # anchor labels
                pl.BlockSpec((1, tn), lambda i, j: (0, j)),       # contrast labels
            ],
            out_specs=pl.BlockSpec((tm, 1), lambda i, j: (i, 0)),
            scratch_shapes=[pltpu.VMEM((tm, 1), jnp.float32)] * 4,
        ),
        compiler_params=pltpu.CompilerParams(
            dimension_semantics=("parallel", "arbitrary")),
    )(a, ct, alab, clab)

    # Tiny final reduction over real anchor rows (padded rows contribute 0).
    return jnp.sum(row_loss[:m_real, 0]) / m_real


# ----------------------------------------------------------------------------
# Plain-JAX glue: build the view-major contrast slab [n_views*bsz, D] directly
# (no (bsz, n_views, D) staging + re-transpose round-trip through HBM).
# ----------------------------------------------------------------------------
def build_fromto_contrast_slabs(n_feat1s, n_spatial_feat1s, n_feat2s,
                                n_spatial_feat2s, labels_t1, labels_t2,
                                num_classes):
    B1 = n_feat1s.shape[0]
    B2 = n_feat2s.shape[0]
    view0 = jnp.concatenate([
        jnp.broadcast_to(n_feat1s[:, None, :], (B1, B2, n_feat1s.shape[1])),
        jnp.broadcast_to(n_feat2s[None, :, :], (B1, B2, n_feat2s.shape[1])),
    ], axis=-1).reshape(B1 * B2, -1)
    view1 = jnp.concatenate([
        jnp.broadcast_to(n_spatial_feat1s[:, None, :], (B1, B2, n_spatial_feat1s.shape[1])),
        jnp.broadcast_to(n_spatial_feat2s[None, :, :], (B1, B2, n_spatial_feat2s.shape[1])),
    ], axis=-1).reshape(B1 * B2, -1)
    labels = (labels_t1[:, None] * num_classes + labels_t2[None, :]).reshape(-1)

    contrast = jnp.concatenate([view0, view1], axis=0)        # view-major [2*bsz, D]
    contrast_labels = jnp.concatenate([labels, labels], axis=0)
    return view0, contrast, labels, contrast_labels


def get_multiview_fromto_contrast_feats(n_feat1s, n_spatial_feat1s,
                                        n_feat2s, n_spatial_feat2s,
                                        labels_t1, labels_t2, num_classes,
                                        fusion='concat'):
    """Torch-helper-compatible output (bsz, n_views, D) — used by the reference check."""
    B1, D1 = n_feat1s.shape
    B2, D2 = n_feat2s.shape
    Ds1 = n_spatial_feat1s.shape[1]
    Ds2 = n_spatial_feat2s.shape[1]

    f1_rep = jnp.broadcast_to(n_feat1s[:, None, :], (B1, B2, D1))
    f2_rep = jnp.broadcast_to(n_feat2s[None, :, :], (B1, B2, D2))
    s1_rep = jnp.broadcast_to(n_spatial_feat1s[:, None, :], (B1, B2, Ds1))
    s2_rep = jnp.broadcast_to(n_spatial_feat2s[None, :, :], (B1, B2, Ds2))

    fromto_n = jnp.concatenate([f1_rep, f2_rep], axis=-1)
    fromto_sp = jnp.concatenate([s1_rep, s2_rep], axis=-1)

    features = jnp.stack([fromto_n, fromto_sp], axis=2).reshape(B1 * B2, 2, -1)
    labels = (labels_t1[:, None] * num_classes + labels_t2[None, :]).reshape(-1)
    return features, labels


class SCCLoss:
    """JAX/Pallas port of the PyTorch SCCLoss forward pass."""

    def __init__(self, params_dict):
        self.temperature = params_dict['temperature']
        self.contrast_mode = params_dict['contrast_mode']
        self.base_temperature = params_dict['base_temperature']
        self.params_dict = params_dict

    def __call__(self, feats_dict, labels_t1, labels_t2):
        # TODO(synk): the label_locs dict in the torch forward is dead code wrt
        # the returned loss, so it is intentionally not reproduced here.
        view0, contrast, labels, contrast_labels = build_fromto_contrast_slabs(
            feats_dict['n_feat1'], feats_dict['n_spatial_feat1'],
            feats_dict['n_feat2'], feats_dict['n_spatial_feat2'],
            labels_t1, labels_t2, self.params_dict['num_classes'])

        if self.contrast_mode == 'one':
            anchor, anchor_labels = view0, labels
        elif self.contrast_mode == 'all':
            anchor, anchor_labels = contrast, contrast_labels
        else:
            raise ValueError(f'Unknown mode: {self.contrast_mode}')

        return scc_contrast_loss(anchor, contrast, anchor_labels, contrast_labels,
                                 temperature=self.temperature,
                                 base_temperature=self.base_temperature)


# ----------------------------------------------------------------------------
# Pure-JAX reference (self-check), mirrors the torch math 1:1
# ----------------------------------------------------------------------------
def _reference_contrast(features, labels, temperature, base_temperature):
    bsz, n_views, d = features.shape
    contrast = jnp.transpose(features, (1, 0, 2)).reshape(n_views * bsz, d)
    anchor = contrast
    labs = jnp.tile(labels, n_views)
    s = (anchor @ contrast.T) / temperature
    logits = s - jnp.max(s, axis=1, keepdims=True)
    n = anchor.shape[0]
    logits_mask = 1.0 - jnp.eye(n, dtype=jnp.float32)
    pos = (labs[:, None] == labs[None, :]).astype(jnp.float32) * logits_mask
    exp_l = jnp.exp(logits) * logits_mask
    log_prob = logits - jnp.log(jnp.sum(exp_l, axis=1, keepdims=True))
    mlpp = jnp.sum(pos * log_prob, axis=1) / jnp.sum(pos, axis=1)
    return jnp.mean(-(temperature / base_temperature) * mlpp)


if __name__ == "__main__":
    key = jax.random.PRNGKey(0)
    k1, k2, k3, k4, k5, k6 = jax.random.split(key, 6)

    B1, B2 = 4, 4
    D1 = Ds1 = 16
    D2 = Ds2 = 16
    num_classes = 3

    def _unit(x):
        return x / jnp.linalg.norm(x, axis=-1, keepdims=True)

    # Projection-head-style (L2-normalized) features: keeps exp(logits / T) in
    # f32 range for both the kernel and the torch-mirroring reference (the raw
    # torch math NaNs on unnormalized random features, which is what the
    # previous run tripped over).
    feats_dict = {
        'n_feat1': _unit(jax.random.normal(k1, (B1, D1), jnp.float32)),
        'n_spatial_feat1': _unit(jax.random.normal(k2, (B1, Ds1), jnp.float32)),
        'n_feat2': _unit(jax.random.normal(k3, (B2, D2), jnp.float32)),
        'n_spatial_feat2': _unit(jax.random.normal(k4, (B2, Ds2), jnp.float32)),
    }
    labels_t1 = jax.random.randint(k5, (B1,), 0, num_classes, jnp.int32)
    labels_t2 = jax.random.randint(k6, (B2,), 0, num_classes, jnp.int32)

    params_dict = {
        'temperature': 0.07,
        'base_temperature': 0.07,
        'contrast_mode': 'all',
        'num_classes': num_classes,
        'fusion': 'concat',
    }

    loss_fn = SCCLoss(params_dict)
    loss = jax.block_until_ready(loss_fn(feats_dict, labels_t1, labels_t2))

    # Self-check against a pure-JAX reference of the same math.
    features, fromto_labels = get_multiview_fromto_contrast_feats(
        feats_dict['n_feat1'], feats_dict['n_spatial_feat1'],
        feats_dict['n_feat2'], feats_dict['n_spatial_feat2'],
        labels_t1, labels_t2, num_classes)
    ref = _reference_contrast(features, fromto_labels,
                              params_dict['temperature'],
                              params_dict['base_temperature'])

    assert bool(jnp.isfinite(loss)), loss
    assert jnp.allclose(loss, ref, rtol=1e-3, atol=1e-3), (loss, ref)

    print("KERNEL_OK")
</pallas_src>

<mosaic_0001>
module attributes {stable_mosaic.version = 11 : i64} {
  func.func @_scc_tile_kernel(%arg0: i32, %arg1: i32, %arg2: memref<32x128xf32, #tpu.memory_space<vmem>>, %arg3: memref<128x128xf32, #tpu.memory_space<vmem>>, %arg4: memref<32x1xi32, #tpu.memory_space<vmem>>, %arg5: memref<1x128xi32, #tpu.memory_space<vmem>>, %arg6: memref<32x1xf32, #tpu.memory_space<vmem>>, %arg7: memref<32x1xf32, #tpu.memory_space<vmem>>, %arg8: memref<32x1xf32, #tpu.memory_space<vmem>>, %arg9: memref<32x1xf32, #tpu.memory_space<vmem>>, %arg10: memref<32x1xf32, #tpu.memory_space<vmem>>) attributes {dimension_semantics = [#tpu.dimension_semantics<parallel>, #tpu.dimension_semantics<arbitrary>], iteration_bounds = array<i64: 1, 1>, scalar_prefetch = 0 : i64, scratch_operands = 4 : i64, tpu.core_type = #tpu.core_type<tc>, window_params = [{transform_indices = @transform_0, window_bounds = array<i64: 32, 128>}, {transform_indices = @transform_1, window_bounds = array<i64: 128, 128>}, {transform_indices = @transform_2, window_bounds = array<i64: 32, 1>}, {transform_indices = @transform_3, window_bounds = array<i64: 1, 128>}, {transform_indices = @transform_4, window_bounds = array<i64: 32, 1>}]} {
    %c0_i32 = arith.constant 0 : i32
    %0 = arith.cmpi eq, %arg1, %c0_i32 : i32
    %1 = arith.extui %0 : i1 to i32
    %c0_i32_0 = arith.constant 0 : i32
    %2 = arith.cmpi ne, %1, %c0_i32_0 : i32
    scf.if %2 {
      %cst_34 = arith.constant -1.000000e+30 : f32
      %61 = vector.broadcast %cst_34 : f32 to vector<32x1xf32>
      %c0_35 = arith.constant 0 : index
      %c0_36 = arith.constant 0 : index
      %62 = vector.load %arg7[%c0_35, %c0_36] : memref<32x1xf32, #tpu.memory_space<vmem>>, vector<32x1xf32>
      tpu.vector_store %arg7[%c0_35, %c0_36], %61 {strides = array<i32>} : memref<32x1xf32, #tpu.memory_space<vmem>>, vector<32x1xf32>,
      %cst_37 = arith.constant 0.000000e+00 : f32
      %63 = vector.broadcast %cst_37 : f32 to vector<32x1xf32>
      %c0_38 = arith.constant 0 : index
      %c0_39 = arith.constant 0 : index
      %64 = vector.load %arg8[%c0_38, %c0_39] : memref<32x1xf32, #tpu.memory_space<vmem>>, vector<32x1xf32>
      tpu.vector_store %arg8[%c0_38, %c0_39], %63 {strides = array<i32>} : memref<32x1xf32, #tpu.memory_space<vmem>>, vector<32x1xf32>,
      %cst_40 = arith.constant 0.000000e+00 : f32
      %65 = vector.broadcast %cst_40 : f32 to vector<32x1xf32>
      %c0_41 = arith.constant 0 : index
      %c0_42 = arith.constant 0 : index
      %66 = vector.load %arg9[%c0_41, %c0_42] : memref<32x1xf32, #tpu.memory_space<vmem>>, vector<32x1xf32>
      tpu.vector_store %arg9[%c0_41, %c0_42], %65 {strides = array<i32>} : memref<32x1xf32, #tpu.memory_space<vmem>>, vector<32x1xf32>,
      %cst_43 = arith.constant 0.000000e+00 : f32
      %67 = vector.broadcast %cst_43 : f32 to vector<32x1xf32>
      %c0_44 = arith.constant 0 : index
      %c0_45 = arith.constant 0 : index
      %68 = vector.load %arg10[%c0_44, %c0_45] : memref<32x1xf32, #tpu.memory_space<vmem>>, vector<32x1xf32>
      tpu.vector_store %arg10[%c0_44, %c0_45], %67 {strides = array<i32>} : memref<32x1xf32, #tpu.memory_space<vmem>>, vector<32x1xf32>,
    } else {
    }
    %c0 = arith.constant 0 : index
    %c0_1 = arith.constant 0 : index
    %3 = vector.load %arg2[%c0, %c0_1] : memref<32x128xf32, #tpu.memory_space<vmem>>, vector<32x128xf32>
    %cst = arith.constant 14.2857141 : f32
    %4 = vector.broadcast %cst : f32 to vector<32x128xf32>
    %5 = arith.mulf %3, %4 : vector<32x128xf32>
    %c0_2 = arith.constant 0 : index
    %c0_3 = arith.constant 0 : index
    %6 = vector.load %arg3[%c0_2, %c0_3] : memref<128x128xf32, #tpu.memory_space<vmem>>, vector<128x128xf32>
    %cst_4 = arith.constant dense<0.000000e+00> : vector<32x128xf32>
    %7 = tpu.matmul %5, %6, %cst_4 {dimension_numbers = #tpu.dot_dimension_numbers<[1], [0], [0], [1], [0, 0, 1, 1], [], []>} : vector<32x128xf32>, vector<128x128xf32>, vector<32x128xf32> -> vector<32x128xf32>
    %c32_i32 = arith.constant 32 : i32
    %8 = arith.muli %arg0, %c32_i32 : i32
    %9 = tpu.iota {dimensions = array<i32: 0>} : vector<32x128xi32>
    %10 = vector.broadcast %8 : i32 to vector<32x128xi32>
    %11 = arith.addi %10, %9 : vector<32x128xi32>
    %c128_i32 = arith.constant 128 : i32
    %12 = arith.muli %arg1, %c128_i32 : i32
    %13 = tpu.iota {dimensions = array<i32: 1>} : vector<32x128xi32>
    %14 = vector.broadcast %12 : i32 to vector<32x128xi32>
    %15 = arith.addi %14, %13 : vector<32x128xi32>
    %16 = arith.cmpi eq, %11, %15 : vector<32x128xi32>
    %c32_i32_5 = arith.constant 32 : i32
    %17 = vector.broadcast %c32_i32_5 : i32 to vector<32x128xi32>
    %18 = arith.cmpi sge, %15, %17 : vector<32x128xi32>
    %19 = arith.ori %16, %18 : vector<32x128xi1>
    %cst_6 = arith.constant -1.000000e+30 : f32
    %20 = vector.broadcast %cst_6 : f32 to vector<32x128xf32>
    %21 = arith.select %19, %20, %7 : vector<32x128xi1>, vector<32x128xf32>
    %c0_7 = arith.constant 0 : index
    %c0_8 = arith.constant 0 : index
    %22 = vector.load %arg7[%c0_7, %c0_8] : memref<32x1xf32, #tpu.memory_space<vmem>>, vector<32x1xf32>
    %cst_9 = arith.constant dense<0xFF800000> : vector<32xf32>
    %23 = vector.multi_reduction <maximumf>, %21, %cst_9 [1] : vector<32x128xf32> to vector<32xf32>
    %24 = vector.shape_cast %23 : vector<32xf32> to vector<32x1xf32>
    %25 = arith.maximumf %22, %24 : vector<32x1xf32>
    %26 = arith.subf %22, %25 : vector<32x1xf32>
    %27 = math.exp %26 : vector<32x1xf32>
    %28 = vector.broadcast %25 : vector<32x1xf32> to vector<32x128xf32>
    %29 = arith.subf %21, %28 : vector<32x128xf32>
    %30 = math.exp %29 : vector<32x128xf32>
    %c0_10 = arith.constant 0 : index
    %c0_11 = arith.constant 0 : index
    %31 = vector.load %arg8[%c0_10, %c0_11] : memref<32x1xf32, #tpu.memory_space<vmem>>, vector<32x1xf32>
    %32 = arith.mulf %27, %31 : vector<32x1xf32>
    %cst_12 = arith.constant dense<0.000000e+00> : vector<32xf32>
    %33 = vector.multi_reduction <add>, %30, %cst_12 [1] : vector<32x128xf32> to vector<32xf32>
    %34 = vector.shape_cast %33 : vector<32xf32> to vector<32x1xf32>
    %35 = arith.addf %32, %34 : vector<32x1xf32>
    %c0_13 = arith.constant 0 : index
    %c0_14 = arith.constant 0 : index
    %36 = vector.load %arg8[%c0_13, %c0_14] : memref<32x1xf32, #tpu.memory_space<vmem>>, vector<32x1xf32>
    tpu.vector_store %arg8[%c0_13, %c0_14], %35 {strides = array<i32>} : memref<32x1xf32, #tpu.memory_space<vmem>>, vector<32x1xf32>,
    %c0_15 = arith.constant 0 : index
    %c0_16 = arith.constant 0 : index
    %37 = vector.load %arg7[%c0_15, %c0_16] : memref<32x1xf32, #tpu.memory_space<vmem>>, vector<32x1xf32>
    tpu.vector_store %arg7[%c0_15, %c0_16], %25 {strides = array<i32>} : memref<32x1xf32, #tpu.memory_space<vmem>>, vector<32x1xf32>,
    %c0_17 = arith.constant 0 : index
    %c0_18 = arith.constant 0 : index
    %38 = vector.load %arg4[%c0_17, %c0_18] : memref<32x1xi32, #tpu.memory_space<vmem>>, vector<32x1xi32>
    %c0_19 = arith.constant 0 : index
    %c0_20 = arith.constant 0 : index
    %39 = vector.load %arg5[%c0_19, %c0_20] : memref<1x128xi32, #tpu.memory_space<vmem>>, vector<1x128xi32>
    %40 = vector.broadcast %38 : vector<32x1xi32> to vector<32x128xi32>
    %41 = vector.broadcast %39 : vector<1x128xi32> to vector<32x128xi32>
    %42 = arith.cmpi eq, %40, %41 : vector<32x128xi32>
    %cst_21 = arith.constant dense<true> : vector<32x128xi1>
    %43 = arith.xori %19, %cst_21 : vector<32x128xi1>
    %44 = arith.andi %42, %43 : vector<32x128xi1>
    %45 = arith.extui %44 : vector<32x128xi1> to vector<32x128xi32>
    %46 = arith.sitofp %45 : vector<32x128xi32> to vector<32x128xf32>
    %c0_22 = arith.constant 0 : index
    %c0_23 = arith.constant 0 : index
    %47 = vector.load %arg9[%c0_22, %c0_23] : memref<32x1xf32, #tpu.memory_space<vmem>>, vector<32x1xf32>
    %cst_24 = arith.constant dense<0.000000e+00> : vector<32xf32>
    %48 = vector.multi_reduction <add>, %46, %cst_24 [1] : vector<32x128xf32> to vector<32xf32>
    %49 = vector.shape_cast %48 : vector<32xf32> to vector<32x1xf32>
    %50 = arith.addf %47, %49 : vector<32x1xf32>
    %c0_25 = arith.constant 0 : index
    %c0_26 = arith.constant 0 : index
    %51 = vector.load %arg9[%c0_25, %c0_26] : memref<32x1xf32, #tpu.memory_space<vmem>>, vector<32x1xf32>
    tpu.vector_store %arg9[%c0_25, %c0_26], %50 {strides = array<i32>} : memref<32x1xf32, #tpu.memory_space<vmem>>, vector<32x1xf32>,
    %c0_27 = arith.constant 0 : index
    %c0_28 = arith.constant 0 : index
    %52 = vector.load %arg10[%c0_27, %c0_28] : memref<32x1xf32, #tpu.memory_space<vmem>>, vector<32x1xf32>
    %53 = arith.mulf %46, %21 : vector<32x128xf32>
    %cst_29 = arith.constant dense<0.000000e+00> : vector<32xf32>
    %54 = vector.multi_reduction <add>, %53, %cst_29 [1] : vector<32x128xf32> to vector<32xf32>
    %55 = vector.shape_cast %54 : vector<32xf32> to vector<32x1xf32>
    %56 = arith.addf %52, %55 : vector<32x1xf32>
    %c0_30 = arith.constant 0 : index
    %c0_31 = arith.constant 0 : index
    %57 = vector.load %arg10[%c0_30, %c0_31] : memref<32x1xf32, #tpu.memory_space<vmem>>, vector<32x1xf32>
    tpu.vector_store %arg10[%c0_30, %c0_31], %56 {strides = array<i32>} : memref<32x1xf32, #tpu.memory_space<vmem>>, vector<32x1xf32>,
    %c0_i32_32 = arith.constant 0 : i32
    %58 = arith.cmpi eq, %arg1, %c0_i32_32 : i32
    %59 = arith.extui %58 : i1 to i32
    %c0_i32_33 = arith.constant 0 : i32
    %60 = arith.cmpi ne, %59, %c0_i32_33 : i32
    scf.if %60 {
      %c0_34 = arith.constant 0 : index
      %c0_35 = arith.constant 0 : index
      %61 = vector.load %arg7[%c0_34, %c0_35] : memref<32x1xf32, #tpu.memory_space<vmem>>, vector<32x1xf32>
      %c0_36 = arith.constant 0 : index
      %c0_37 = arith.constant 0 : index
      %62 = vector.load %arg8[%c0_36, %c0_37] : memref<32x1xf32, #tpu.memory_space<vmem>>, vector<32x1xf32>
      %63 = math.log %62 : vector<32x1xf32>
      %64 = arith.addf %61, %63 : vector<32x1xf32>
      %c0_38 = arith.constant 0 : index
      %c0_39 = arith.constant 0 : index
      %65 = vector.load %arg9[%c0_38, %c0_39] : memref<32x1xf32, #tpu.memory_space<vmem>>, vector<32x1xf32>
      %c0_40 = arith.constant 0 : index
      %c0_41 = arith.constant 0 : index
      %66 = vector.load %arg10[%c0_40, %c0_41] : memref<32x1xf32, #tpu.memory_space<vmem>>, vector<32x1xf32>
      %67 = arith.mulf %65, %64 : vector<32x1xf32>
      %68 = arith.subf %66, %67 : vector<32x1xf32>
      %cst_42 = arith.constant 1.000000e+00 : f32
      %69 = vector.broadcast %cst_42 : f32 to vector<32x1xf32>
      %70 = arith.maximumf %65, %69 : vector<32x1xf32>
      %71 = arith.divf %68, %70 : vector<32x1xf32>
      %cst_43 = arith.constant -1.000000e+00 : f32
      %72 = vector.broadcast %cst_43 : f32 to vector<32x1xf32>
      %73 = arith.mulf %72, %71 : vector<32x1xf32>
      %c0_44 = arith.constant 0 : index
      %c0_45 = arith.constant 0 : index
      %74 = vector.load %arg6[%c0_44, %c0_45] : memref<32x1xf32, #tpu.memory_space<vmem>>, vector<32x1xf32>
      tpu.vector_store %arg6[%c0_44, %c0_45], %73 {strides = array<i32>} : memref<32x1xf32, #tpu.memory_space<vmem>>, vector<32x1xf32>,
    } else {
    }
    return
  }
  func.func @transform_0(%arg0: i32, %arg1: i32) -> (i32, i32) {
    %c0_i32 = arith.constant 0 : i32
    %c0_i32_0 = arith.constant 0 : i32
    return %arg0, %c0_i32 : i32, i32
  }
  func.func @transform_1(%arg0: i32, %arg1: i32) -> (i32, i32) {
    %c0_i32 = arith.constant 0 : i32
    %c0_i32_0 = arith.constant 0 : i32
    return %c0_i32, %arg1 : i32, i32
  }
  func.func @transform_2(%arg0: i32, %arg1: i32) -> (i32, i32) {
    %c0_i32 = arith.constant 0 : i32
    %c0_i32_0 = arith.constant 0 : i32
    return %arg0, %c0_i32 : i32, i32
  }
  func.func @transform_3(%arg0: i32, %arg1: i32) -> (i32, i32) {
    %c0_i32 = arith.constant 0 : i32
    %c0_i32_0 = arith.constant 0 : i32
    return %c0_i32, %arg1 : i32, i32
  }
  func.func @transform_4(%arg0: i32, %arg1: i32) -> (i32, i32) {
    %c0_i32 = arith.constant 0 : i32
    %c0_i32_0 = arith.constant 0 : i32
    return %arg0, %c0_i32 : i32, i32
  }
}

</mosaic_0001>

<bundles_post_ra>
// kernel: tpu_custom_call.1
= control target key start
LH: loop header
LB: loop body
LE: loop exit
PB: predicated region body
PF: predicated region fallthrough
CT: control target
= control target key end

     0   :  { %9 = vsyncpa [#allocation7], 0  ;;  %s604_s15 = smov [#allocation6]   ;;  %s847_s0 = inlined_call_operand.vmem [shape: f32[32,128], index: 0, kind: input, shape index: {}]   ;;  %s848_s1 = inlined_call_operand.hbm [shape: f32[128,128], index: 1, kind: input, shape index: {}]   ;;  %s849_s2 = inlined_call_operand.vmem [shape: s32[32,1], index: 2, kind: input, shape index: {}]   ;;  %s850_s3 = inlined_call_operand.vmem [shape: s32[1,128], index: 3, kind: input, shape index: {}]   ;;  %s851_s4 = inlined_call_operand.vmem [shape: f32[32,1], index: 4, kind: output, shape index: {}]  }
   0x1   :  { %s17_s16 = sshll.u32 %s604_s15, 4  ;;  %s580_s19 = scalar_lea.hbm %s848_s1, 2048  ;;  %s18_s16 = int_to_ptr.vmem [resolvable:$true] %s17_s16 }
   0x2   :  { %p581_p0 = scmp.ne.s32.totalorder %s848_s1, %s580_s19  ;;  %p584_p1 = scmp.lt.u32.totalorder %s580_s19, %s848_s1 }
   0x4   :  { %p586_p2 = pnand %p584_p1, %p581_p0 }
   0x6   :  { %589 = shalt.err (!%p586_p2)
}
   0x7   :  { %s590_s24 = scalar_lea.vmem %s18_s16, 2048  ;;  %p595_p4 = scmp.lt.s32.totalorder %s18_s16, %s18_s16 }
   0x8   :  { %p591_p3 = scmp.ne.s32.totalorder %s18_s16, %s590_s24  ;;  %p596_p5 = scmp.lt.s32.totalorder %s590_s24, %s590_s24 }
   0xa   :  { %p597_p6 = por %p596_p5, %p595_p4 }
   0xc   :  { %p598_p7 = pnand %p597_p6, %p591_p3 }
   0xe   :  { %601 = shalt.err (!%p598_p7)
}
   0xf   :  { %s605_s25 = smov 128   ;;  %s606_s26 = smov 8  }
  0x10   :  { %23 = dma.hbm_to_vmem [thread:$0]  %s848_s1, 2048, %s18_s16, [#allocation7], %s605_s25, %s605_s25, %s606_s26  }
  0x11   :  { %602 = dma.done.wait [#allocation7], 2048  }
  0x12   :  { %603 = vsyncadd [#allocation7], 4294965248  ;;  %v60_v0 = vld [vmem:[#allocation6] sm:$0xff]  ;;  %v61_v1 = vld [vmem:[#allocation6 + $0x8] sm:$0xff]  ;;  %vm35_vm0 = vcmask 7168   ;;  %v162_v33 = vlaneseq  ;;  %v608_v51 = vmov 0  }
  0x13   :  { %v62_v2 = vld [vmem:[#allocation6 + $0x10] sm:$0xff]  ;;  %v491_v3 = vpack.c.bf16 %v61_v1, %v60_v0  ;;  %v63_v4 = vld [vmem:[#allocation6 + $0x18] sm:$0xff]  ;;  %v64_v6 = vld [vmem:[#allocation6 + $0x20] sm:$0xff]  ;;  %v607_v32 = vmov -1e+30   ;;  %546 = vset.pattern.permute.xlu0 %v608_v51  ;;  %547 = vset.pattern.permute.xlu1 %v608_v51  ;;  %v609_v52 = vmov 0.0  }
  0x14   :  { %v495_v5 = vpack.c.bf16 %v63_v4, %v62_v2  ;;  %v65_v7 = vld [vmem:[#allocation6 + $0x28] sm:$0xff]  ;;  %v52_v9 = vld [vmem:[%s847_s0] sm:$0xff]  ;;  %v66_v10 = vld [vmem:[#allocation6 + $0x30] sm:$0xff]  ;;  %36 = vst.msk [vmem:[#allocation2] sm:$0xff] %vm35_vm0, %v607_v32  ;;  %v163_v34 = vshrl.u32 %v162_v33, 7  ;;  %v174_v35 = vand.u32 127, %v162_v33 }
  0x15   :  { %492 = vmatprep.subr.bf16.mxu0 %v491_v3  ;;  %523 = vmatprep.subr.bf16.mxu1 %v491_v3  ;;  %v499_v8 = vpack.c.bf16 %v65_v7, %v64_v6  ;;  %v67_v11 = vld [vmem:[#allocation6 + $0x38] sm:$0xff]  ;;  %v56_v12 = vmul.f32 14.285714, %v52_v9  ;;  %v54_v13 = vld [vmem:[%s847_s0 + $0x10] sm:$0xff]  ;;  %v68_v16 = vld [vmem:[#allocation6 + $0x40] sm:$0xff]  ;;  %37 = vst.msk [vmem:[#allocation2 + $0x8] sm:$0xff] %vm35_vm0, %v607_v32 }
  0x16   :  { %494 = vmatpush3.bf16.msra.mxu0 %v491_v3  ;;  %531 = vmatpush3.bf16.msra.mxu1 %v491_v3  ;;  %v58_v14 = vmul.f32 14.285714, %v54_v13  ;;  %v503_v15 = vpack.c.bf16 %v67_v11, %v66_v10  ;;  %v69_v17 = vld [vmem:[#allocation6 + $0x48] sm:$0xff]  ;;  %v70_v19 = vld [vmem:[#allocation6 + $0x50] sm:$0xff]  ;;  %v71_v20 = vld [vmem:[#allocation6 + $0x58] sm:$0xff]  ;;  %38 = vst.msk [vmem:[#allocation2 + $0x10] sm:$0xff] %vm35_vm0, %v607_v32  ;;  %vm177_vm2 = vcmp.eq.s32.totalorder %v163_v34, %v174_v35 }
  0x17   :  { %496 = vmatprep.subr.bf16.mxu0 %v495_v5  ;;  %524 = vmatprep.subr.bf16.mxu1 %v495_v5  ;;  %v507_v18 = vpack.c.bf16 %v69_v17, %v68_v16  ;;  %v511_v21 = vpack.c.bf16 %v71_v20, %v70_v19  ;;  %v72_v22 = vld [vmem:[#allocation6 + $0x60] sm:$0xff]  ;;  %v73_v23 = vld [vmem:[#allocation6 + $0x68] sm:$0xff]  ;;  %v74_v25 = vld [vmem:[#allocation6 + $0x70] sm:$0xff]  ;;  %39 = vst.msk [vmem:[#allocation2 + $0x18] sm:$0xff] %vm35_vm0, %v607_v32  ;;  %v165_v36 = vadd.s32 16, %v163_v34  ;;  %v166_v37 = vadd.s32 24, %v163_v34 }
  0x18   :  { %485 = vmatprep.mubr.f32.mxu0 %v56_v12  ;;  %488 = vmatprep.mubr.f32.mxu1 %v58_v14  ;;  %v515_v24 = vpack.c.bf16 %v73_v23, %v72_v22  ;;  %v75_v26 = vld [vmem:[#allocation6 + $0x78] sm:$0xff]  ;;  %v53_v28 = vld [vmem:[%s847_s0 + $0x8] sm:$0xff]  ;;  %vm181_vm1 = vcmp.ge.s32.totalorder %v174_v35, 32  ;;  %v164_v38 = vadd.s32 8, %v163_v34  ;;  %40 = vst.msk [vmem:[#allocation3] sm:$0xff] %vm35_vm0, %v609_v52  ;;  %41 = vst.msk [vmem:[#allocation3 + $0x8] sm:$0xff] %vm35_vm0, %v609_v52 }
  0x19   :  { %v519_v27 = vpack.c.bf16 %v75_v26, %v74_v25  ;;  %v55_v29 = vld [vmem:[%s847_s0 + $0x18] sm:$0xff]  ;;  %v57_v30 = vmul.f32 14.285714, %v53_v28  ;;  %vm179_vm3 = vcmp.eq.s32.totalorder %v165_v36, %v174_v35  ;;  %vm665_vm4 = vmor %vm177_vm2, %vm181_vm1  ;;  %vm180_vm5 = vcmp.eq.s32.totalorder %v166_v37, %v174_v35  ;;  %42 = vst.msk [vmem:[#allocation3 + $0x10] sm:$0xff] %vm35_vm0, %v609_v52  ;;  %v280_v6 = vld [vmem:[%s849_s2 + $0x8] sm:$0xff] }
  0x1a   :  { %498 = vmatpush3.bf16.msra.mxu0 %v495_v5  ;;  %532 = vmatpush3.bf16.msra.mxu1 %v495_v5  ;;  %v59_v31 = vmul.f32 14.285714, %v55_v29  ;;  %vm670_vm6 = vmor %vm179_vm3, %vm181_vm1  ;;  %vm178_vm7 = vcmp.eq.s32.totalorder %v164_v38, %v174_v35  ;;  %43 = vst.msk [vmem:[#allocation3 + $0x18] sm:$0xff] %vm35_vm0, %v609_v52  ;;  %v279_v5 = vld [vmem:[%s849_s2] sm:$0xff]  ;;  %v281_v7 = vld [vmem:[%s849_s2 + $0x10] sm:$0xff]  ;;  %vm610_vm11 = vmmov 1  }
  0x1b   :  { %500 = vmatprep.subr.bf16.mxu0 %v499_v8  ;;  %525 = vmatprep.subr.bf16.mxu1 %v499_v8  ;;  %vm675_vm8 = vmor %vm180_vm5, %vm181_vm1  ;;  %44 = vst.msk [vmem:[#allocation4] sm:$0xff] %vm35_vm0, %v609_v52  ;;  %v728_v53 = vld [vmem:[#allocation2] sm:$0xff] }
  0x1c   :  { %vm688_vm9 = vmor %vm178_vm7, %vm181_vm1  ;;  %45 = vst.msk [vmem:[#allocation4 + $0x8] sm:$0xff] %vm35_vm0, %v609_v52  ;;  %v738_v59 = vld [vmem:[#allocation2 + $0x8] sm:$0xff]  ;;  %v428_v22 = vld [vmem:[%s850_s3] ss:$0 sm:$0xff] }
  0x1d   :  { %46 = vst.msk [vmem:[#allocation4 + $0x10] sm:$0xff] %vm35_vm0, %v609_v52  ;;  %47 = vst.msk [vmem:[#allocation4 + $0x18] sm:$0xff] %vm35_vm0, %v609_v52  ;;  %v730_v54 = vld [vmem:[#allocation2 + $0x10] sm:$0xff] }
  0x1e   :  { %502 = vmatpush3.bf16.msra.mxu0 %v499_v8  ;;  %533 = vmatpush3.bf16.msra.mxu1 %v499_v8  ;;  %48 = vst.msk [vmem:[#allocation5] sm:$0xff] %vm35_vm0, %v609_v52  ;;  %49 = vst.msk [vmem:[#allocation5 + $0x8] sm:$0xff] %vm35_vm0, %v609_v52  ;;  %v740_v60 = vld [vmem:[#allocation2 + $0x18] sm:$0xff] }
  0x1f   :  { %504 = vmatprep.subr.bf16.mxu0 %v503_v15  ;;  %526 = vmatprep.subr.bf16.mxu1 %v503_v15  ;;  %50 = vst.msk [vmem:[#allocation5 + $0x10] sm:$0xff] %vm35_vm0, %v609_v52  ;;  %51 = vst.msk [vmem:[#allocation5 + $0x18] sm:$0xff] %vm35_vm0, %v609_v52  ;;  %v282_v8 = vld [vmem:[%s849_s2 + $0x18] sm:$0xff] }
  0x20   :  { %vm304_vm12 = vmxor %vm665_vm4, %vm610_vm11 }
  0x21   :  { %vm306_vm15 = vmxor %vm670_vm6, %vm610_vm11 }
  0x22   :  { %506 = vmatpush3.bf16.msra.mxu0 %v503_v15  ;;  %534 = vmatpush3.bf16.msra.mxu1 %v503_v15  ;;  %vm305_vm3 = vmxor %vm688_vm9, %vm610_vm11 }
  0x23   :  { %508 = vmatprep.subr.bf16.mxu0 %v507_v18  ;;  %527 = vmatprep.subr.bf16.mxu1 %v507_v18 }
  0x26   :  { %510 = vmatpush3.bf16.msra.mxu0 %v507_v18  ;;  %535 = vmatpush3.bf16.msra.mxu1 %v507_v18 }
  0x27   :  { %512 = vmatprep.subr.bf16.mxu0 %v511_v21  ;;  %528 = vmatprep.subr.bf16.mxu1 %v511_v21 }
  0x2a   :  { %514 = vmatpush3.bf16.msra.mxu0 %v511_v21  ;;  %536 = vmatpush3.bf16.msra.mxu1 %v511_v21 }
  0x2b   :  { %516 = vmatprep.subr.bf16.mxu0 %v515_v24  ;;  %529 = vmatprep.subr.bf16.mxu1 %v515_v24 }
  0x2e   :  { %518 = vmatpush3.bf16.msra.mxu0 %v515_v24  ;;  %537 = vmatpush3.bf16.msra.mxu1 %v515_v24 }
  0x2f   :  { %520 = vmatprep.subr.bf16.mxu0 %v519_v27  ;;  %530 = vmatprep.subr.bf16.mxu1 %v519_v27 }
  0x32   :  { %522 = vmatpush3.bf16.msra.mxu0 %v519_v27  ;;  %538 = vmatpush3.bf16.msra.mxu1 %v519_v27 }
  0x35   :  { %486 = vmatmul.mubr.f32.vlgmr.msra.gmra.mrb[0].mxu0 %v57_v30  ;;  %489 = vmatmul.mubr.f32.vlgmr.msra.gmra.mrb[0].mxu1 %v59_v31 }
 0x108   :  { %v487_v41 = vpop.f32.mrb[0].mxu0  ;;  %v490_v42 = vpop.f32.mrb[0].mxu1 }
 0x109   :  { %v142_v43 = vpop.f32.mrb[1].mxu0  ;;  %v152_v45 = vpop.f32.mrb[1].mxu1  ;;  %v696_v49 = vsel %vm675_vm8, -1e+30, %v490_v42  ;;  %v700_v50 = vsel %vm688_vm9, -1e+30, %v487_v41 }
 0x10a   :  { %v681_v46 = vsel %vm665_vm4, -1e+30, %v142_v43  ;;  %v685_v47 = vsel %vm670_vm6, -1e+30, %v152_v45  ;;  %vm307_vm6 = vmxor %vm675_vm8, %vm610_vm11  ;;  %v251_v43 = vld [vmem:[#allocation3 + $0x8] sm:$0xff] }
 0x10b   :  { %194 = vmax.xlane.f32.xlu0 %v681_v46  ;;  %198 = vmax.xlane.f32.xlu1 %v685_v47 }
 0x10f   :  { %196 = vmax.xlane.f32.xlu0 %v700_v50  ;;  %200 = vmax.xlane.f32.xlu1 %v696_v49 }
 0x198   :  { %v195_v55 = vpop.xlane.xlu0 %194  ;;  %v199_v56 = vpop.xlane.xlu1 %198 }
 0x199   :  { %v733_v57 = vmax.f32 %v728_v53, %v195_v55  ;;  %v736_v58 = vmax.f32 %v730_v54, %v199_v56  ;;  %v320_v55 = vld [vmem:[#allocation4] sm:$0xff] }
 0x19b   :  { %v206_v61 = vsub.f32 %v728_v53, %v733_v57  ;;  %275 = vst.msk [vmem:[#allocation2] sm:$0xff] %vm35_vm0, %v733_v57  ;;  %v208_v62 = vsub.f32 %v730_v54, %v736_v58  ;;  %277 = vst.msk [vmem:[#allocation2 + $0x10] sm:$0xff] %vm35_vm0, %v736_v58  ;;  %220 = vperm.xlu0 %546, %v733_v57  }
 0x19c   :  { %v197_v63 = vpop.xlane.xlu0 %196  ;;  %v201_v0 = vpop.xlane.xlu1 %200 }
 0x19d   :  { %v752_v1 = vmax.f32 %v738_v59, %v197_v63  ;;  %v755_v2 = vmax.f32 %v740_v60, %v201_v0  ;;  %v214_v39 = vmul.f32 1.442695, %v208_v62  ;;  %v210_v41 = vmul.f32 1.442695, %v206_v61  ;;  %v322_v62 = vld [vmem:[#allocation4 + $0x10] sm:$0xff] }
 0x19f   :  { %v207_v3 = vsub.f32 %v738_v59, %v752_v1  ;;  %276 = vst.msk [vmem:[#allocation2 + $0x8] sm:$0xff] %vm35_vm0, %v752_v1  ;;  %v209_v4 = vsub.f32 %v740_v60, %v755_v2  ;;  %278 = vst.msk [vmem:[#allocation2 + $0x18] sm:$0xff] %vm35_vm0, %v755_v2  ;;  %225 = vperm.xlu1 %547, %v752_v1   ;;  %v250_v59 = vld [vmem:[#allocation3] sm:$0xff] }
 0x1a1   :  { %v212_v38 = vmul.f32 1.442695, %v207_v3  ;;  %v216_v40 = vmul.f32 1.442695, %v209_v4 }
 0x1a3   :  { %230 = vperm.xlu1 %547, %v736_v58  }
 0x1a7   :  { %235 = vperm.xlu1 %547, %v755_v2  }
 0x1ab   :  { %285 = vperm.xlu1 %547, %v279_v5  }
 0x1af   :  { %288 = vperm.xlu1 %547, %v280_v6   ;;  %v321_v6 = vld [vmem:[#allocation4 + $0x8] sm:$0xff] }
 0x1b3   :  { %291 = vperm.xlu1 %547, %v281_v7   ;;  %v340_v7 = vld [vmem:[#allocation5] sm:$0xff] }
 0x1b7   :  { %294 = vperm.xlu1 %547, %v282_v8  }
 0x21a   :  { %v221_v14 = vpop.permute.xlu0 %220 }
 0x21b   :  { %v238_v17 = vsub.f32 %v681_v46, %v221_v14  ;;  %v342_v14 = vld [vmem:[#allocation5 + $0x10] sm:$0xff] }
 0x21d   :  { %v242_v21 = vmul.f32 1.442695, %v238_v17 }
 0x21e   :  { %v226_v9 = vpop.permute.xlu1 %225 }
 0x21f   :  { %v239_v10 = vsub.f32 %v700_v50, %v226_v9 }
 0x221   :  { %v244_v11 = vmul.f32 1.442695, %v239_v10 }
 0x222   :  { %v231_v12 = vpop.permute.xlu1 %230 }
 0x223   :  { %548 = vpow2.f32 %v244_v11  ;;  %v240_v13 = vsub.f32 %v685_v47, %v231_v12 }
 0x225   :  { %v246_v15 = vmul.f32 1.442695, %v240_v13  ;;  %v323_v13 = vld [vmem:[#allocation4 + $0x18] sm:$0xff] }
 0x226   :  { %v236_v16 = vpop.permute.xlu1 %235 }
 0x227   :  { %550 = vpow2.f32 %v246_v15  ;;  %v241_v18 = vsub.f32 %v696_v49, %v236_v16 }
 0x229   :  { %v248_v19 = vmul.f32 1.442695, %v241_v18 }
 0x22a   :  { %v286_v20 = vpop.permute.xlu1 %285 }
 0x22b   :  { %552 = vpow2.f32 %v248_v19  ;;  %vm300_vm10 = vcmp.eq.s32.totalorder %v286_v20, %v428_v22 }
 0x22c   :  { %554 = vpow2.f32 %v242_v21  ;;  %vm308_vm13 = vmand %vm300_vm10, %vm304_vm12  ;;  %v341_v21 = vld [vmem:[#allocation5 + $0x8] sm:$0xff] }
 0x22d   :  { %v549_v23 = vpop.eup %548  ;;  %v429_v28 = vsel %vm308_vm13, 1.0, %v609_v52  ;;  %556 = vpow2.f32 %v212_v38 }
 0x22e   :  { %v289_v24 = vpop.permute.xlu1 %288  ;;  %260 = vadd.xlane.f32.xlu0 %v549_v23  ;;  %v344_v32 = vmul.f32 %v429_v28, %v681_v46  ;;  %558 = vpow2.f32 %v214_v39 }
 0x22f   :  { %vm301_vm2 = vcmp.eq.s32.totalorder %v289_v24, %v428_v22  ;;  %560 = vpow2.f32 %v216_v40 }
 0x230   :  { %vm309_vm4 = vmand %vm301_vm2, %vm305_vm3  ;;  %562 = vpow2.f32 %v210_v41  ;;  %v368_v41 = vld [vmem:[#allocation2 + $0x8] sm:$0xff] }
 0x231   :  { %v551_v25 = vpop.eup %550  ;;  %v430_v33 = vsel %vm309_vm4, 1.0, %v609_v52 }
 0x232   :  { %v292_v26 = vpop.permute.xlu1 %291  ;;  %262 = vadd.xlane.f32.xlu0 %v551_v25  ;;  %v345_v36 = vmul.f32 %v430_v33, %v700_v50 }
 0x233   :  { %vm302_vm14 = vcmp.eq.s32.totalorder %v292_v26, %v428_v22 }
 0x234   :  { %vm310_vm1 = vmand %vm302_vm14, %vm306_vm15 }
 0x235   :  { %v553_v27 = vpop.eup %552  ;;  %v431_v31 = vsel %vm310_vm1, 1.0, %v609_v52 }
 0x236   :  { %264 = vadd.xlane.f32.xlu1 %v553_v27  ;;  %324 = vadd.xlane.f32.xlu0 %v429_v28  ;;  %v295_v29 = vpop.permute.xlu1 %294  ;;  %v555_v30 = vpop.eup %554  ;;  %v346_v34 = vmul.f32 %v431_v31, %v685_v47  ;;  %v252_v47 = vld [vmem:[#allocation3 + $0x10] sm:$0xff] }
 0x237   :  { %vm303_vm5 = vcmp.eq.s32.totalorder %v295_v29, %v428_v22  ;;  %v557_v42 = vpop.eup %556 }
 0x238   :  { %vm311_vm7 = vmand %vm303_vm5, %vm307_vm6  ;;  %v255_v44 = vmul.f32 %v557_v42, %v251_v43  ;;  %v559_v45 = vpop.eup %558 }
 0x239   :  { %v432_v35 = vsel %vm311_vm7, 1.0, %v609_v52  ;;  %v561_v50 = vpop.eup %560  ;;  %v253_v52 = vld [vmem:[#allocation3 + $0x18] sm:$0xff] }
 0x23a   :  { %328 = vadd.xlane.f32.xlu0 %v431_v31  ;;  %258 = vadd.xlane.f32.xlu1 %v555_v30  ;;  %v347_v37 = vmul.f32 %v432_v35, %v696_v49  ;;  %v256_v49 = vmul.f32 %v559_v45, %v252_v47  ;;  %v257_v53 = vmul.f32 %v561_v50, %v253_v52  ;;  %v563_v56 = vpop.eup %562  ;;  %v343_v30 = vld [vmem:[#allocation5 + $0x18] sm:$0xff]  ;;  %v369_v31 = vld [vmem:[#allocation2 + $0x10] sm:$0xff]  ;;  %v367_v50 = vld [vmem:[#allocation2] sm:$0xff] }
 0x23b   :  { %v254_v0 = vmul.f32 %v563_v56, %v250_v59 }
 0x23e   :  { %348 = vadd.xlane.f32.xlu0 %v344_v32  ;;  %326 = vadd.xlane.f32.xlu1 %v430_v33 }
 0x242   :  { %352 = vadd.xlane.f32.xlu0 %v346_v34  ;;  %330 = vadd.xlane.f32.xlu1 %v432_v35 }
 0x246   :  { %350 = vadd.xlane.f32.xlu1 %v345_v36 }
 0x24a   :  { %354 = vadd.xlane.f32.xlu1 %v347_v37 }
 0x2bb   :  { %v261_v46 = vpop.xlane.xlu0 %260 }
 0x2bc   :  { %v267_v48 = vadd.f32 %v261_v46, %v255_v44 }
 0x2be   :  { %272 = vst.msk [vmem:[#allocation3 + $0x8] sm:$0xff] %vm35_vm0, %v267_v48 }
 0x2bf   :  { %v263_v51 = vpop.xlane.xlu0 %262 }
 0x2c0   :  { %v268_v54 = vadd.f32 %v263_v51, %v256_v49  ;;  %v370_v51 = vld [vmem:[#allocation2 + $0x18] sm:$0xff] }
 0x2c2   :  { %273 = vst.msk [vmem:[#allocation3 + $0x10] sm:$0xff] %vm35_vm0, %v268_v54 }
 0x2c3   :  { %v265_v57 = vpop.xlane.xlu1 %264  ;;  %v325_v58 = vpop.xlane.xlu0 %324 }
 0x2c4   :  { %v269_v60 = vadd.f32 %v265_v57, %v257_v53  ;;  %v332_v61 = vadd.f32 %v325_v58, %v320_v55 }
 0x2c5   :  { %v372_v63 = vld [vmem:[#allocation3 + $0x8] sm:$0xff] }
 0x2c6   :  { %274 = vst.msk [vmem:[#allocation3 + $0x18] sm:$0xff] %vm35_vm0, %v269_v60  ;;  %336 = vst.msk [vmem:[#allocation4] sm:$0xff] %vm35_vm0, %v332_v61  ;;  %564 = vlog2.f32 %v372_v63 }
 0x2c7   :  { %v259_v1 = vpop.xlane.xlu1 %258  ;;  %v329_v2 = vpop.xlane.xlu0 %328 }
 0x2c8   :  { %v266_v3 = vadd.f32 %v259_v1, %v254_v0  ;;  %v334_v4 = vadd.f32 %v329_v2, %v322_v62 }
 0x2c9   :  { %v373_v5 = vld [vmem:[#allocation3 + $0x10] sm:$0xff] }
 0x2ca   :  { %566 = vlog2.f32 %v373_v5  ;;  %271 = vst.msk [vmem:[#allocation3] sm:$0xff] %vm35_vm0, %v266_v3  ;;  %338 = vst.msk [vmem:[#allocation4 + $0x10] sm:$0xff] %vm35_vm0, %v334_v4 }
 0x2cb   :  { %v327_v8 = vpop.xlane.xlu1 %326  ;;  %v349_v9 = vpop.xlane.xlu0 %348 }
 0x2cc   :  { %v333_v10 = vadd.f32 %v327_v8, %v321_v6  ;;  %v356_v11 = vadd.f32 %v349_v9, %v340_v7 }
 0x2cd   :  { %v374_v12 = vld [vmem:[#allocation3 + $0x18] sm:$0xff]  ;;  %v387_v24 = vld [vmem:[#allocation4] sm:$0xff] }
 0x2ce   :  { %568 = vlog2.f32 %v374_v12  ;;  %337 = vst.msk [vmem:[#allocation4 + $0x8] sm:$0xff] %vm35_vm0, %v333_v10  ;;  %360 = vst.msk [vmem:[#allocation5] sm:$0xff] %vm35_vm0, %v356_v11  ;;  %v403_v32 = vmax.f32 %v387_v24, 1.0 }
 0x2cf   :  { %v331_v15 = vpop.xlane.xlu1 %330  ;;  %v353_v16 = vpop.xlane.xlu0 %352 }
 0x2d0   :  { %v335_v17 = vadd.f32 %v331_v15, %v323_v13  ;;  %v358_v18 = vadd.f32 %v353_v16, %v342_v14  ;;  %v565_v23 = vpop.eup %564 }
 0x2d1   :  { %v371_v19 = vld [vmem:[#allocation3] sm:$0xff]  ;;  %v389_v20 = vld [vmem:[#allocation4 + $0x10] sm:$0xff]  ;;  %v378_v35 = vmul.f32 0.6931472, %v565_v23 }
 0x2d2   :  { %570 = vlog2.f32 %v371_v19  ;;  %v405_v22 = vmax.f32 %v389_v20, 1.0  ;;  %339 = vst.msk [vmem:[#allocation4 + $0x18] sm:$0xff] %vm35_vm0, %v335_v17  ;;  %362 = vst.msk [vmem:[#allocation5 + $0x10] sm:$0xff] %vm35_vm0, %v358_v18 }
 0x2d3   :  { %v351_v25 = vpop.xlane.xlu1 %350  ;;  %v384_v44 = vadd.f32 %v378_v35, %v368_v41 }
 0x2d4   :  { %v567_v26 = vpop.eup %566  ;;  %572 = vrcp.f32 %v405_v22  ;;  %v357_v27 = vadd.f32 %v351_v25, %v341_v21 }
 0x2d5   :  { %v380_v28 = vmul.f32 0.6931472, %v567_v26  ;;  %v388_v29 = vld [vmem:[#allocation4 + $0x8] sm:$0xff]  ;;  %v391_v61 = vld [vmem:[#allocation5] sm:$0xff] }
 0x2d6   :  { %v404_v33 = vmax.f32 %v388_v29, 1.0  ;;  %361 = vst.msk [vmem:[#allocation5 + $0x8] sm:$0xff] %vm35_vm0, %v357_v27  ;;  %v396_v54 = vmul.f32 %v388_v29, %v384_v44 }
 0x2d7   :  { %v385_v34 = vadd.f32 %v380_v28, %v369_v31  ;;  %v355_v36 = vpop.xlane.xlu1 %354 }
 0x2d8   :  { %v569_v37 = vpop.eup %568  ;;  %574 = vrcp.f32 %v404_v33  ;;  %v359_v38 = vadd.f32 %v355_v36, %v343_v30 }
 0x2d9   :  { %v397_v39 = vmul.f32 %v389_v20, %v385_v34  ;;  %v390_v40 = vld [vmem:[#allocation4 + $0x18] sm:$0xff]  ;;  %576 = vrcp.f32 %v403_v32  ;;  %v393_v43 = vld [vmem:[#allocation5 + $0x10] sm:$0xff]  ;;  %v382_v45 = vmul.f32 0.6931472, %v569_v37 }
 0x2da   :  { %v406_v42 = vmax.f32 %v390_v40, 1.0  ;;  %363 = vst.msk [vmem:[#allocation5 + $0x18] sm:$0xff] %vm35_vm0, %v359_v38 }
 0x2db   :  { %v401_v48 = vsub.f32 %v393_v43, %v397_v39  ;;  %v386_v53 = vadd.f32 %v382_v45, %v370_v51 }
 0x2dc   :  { %v571_v46 = vpop.eup %570  ;;  %578 = vrcp.f32 %v406_v42 }
 0x2dd   :  { %v376_v47 = vmul.f32 0.6931472, %v571_v46  ;;  %v392_v52 = vld [vmem:[#allocation5 + $0x8] sm:$0xff]  ;;  %v398_v0 = vmul.f32 %v390_v40, %v386_v53 }
 0x2de   :  { %v573_v49 = vpop.eup %572  ;;  %v400_v59 = vsub.f32 %v392_v52, %v396_v54 }
 0x2df   :  { %v383_v55 = vadd.f32 %v376_v47, %v367_v50  ;;  %v412_v56 = vmul.f32 %v573_v49, %v401_v48 }
 0x2e1   :  { %v395_v57 = vmul.f32 %v387_v24, %v383_v55  ;;  %v417_v58 = vmul.f32 -1.0, %v412_v56  ;;  %v394_v62 = vld [vmem:[#allocation5 + $0x18] sm:$0xff] }
 0x2e2   :  { %v575_v60 = vpop.eup %574  ;;  %v402_v5 = vsub.f32 %v394_v62, %v398_v0 }
 0x2e3   :  { %v399_v63 = vsub.f32 %v391_v61, %v395_v57  ;;  %421 = vst.msk [vmem:[%s851_s4 + $0x10] sm:$0xff] %vm35_vm0, %v417_v58  ;;  %v410_v1 = vmul.f32 %v575_v60, %v400_v59  ;;  %v577_v2 = vpop.eup %576 }
 0x2e5   :  { %v408_v3 = vmul.f32 %v577_v2, %v399_v63  ;;  %v416_v4 = vmul.f32 -1.0, %v410_v1 }
 0x2e6   :  { %v579_v6 = vpop.eup %578 }
 0x2e7   :  { %v415_v7 = vmul.f32 -1.0, %v408_v3  ;;  %420 = vst.msk [vmem:[%s851_s4 + $0x8] sm:$0xff] %vm35_vm0, %v416_v4  ;;  %v414_v8 = vmul.f32 %v579_v6, %v402_v5 }
 0x2e9   :  { %419 = vst.msk [vmem:[%s851_s4] sm:$0xff] %vm35_vm0, %v415_v7  ;;  %v418_v9 = vmul.f32 -1.0, %v414_v8 }
 0x2eb   :  { %422 = vst.msk [vmem:[%s851_s4 + $0x18] sm:$0xff] %vm35_vm0, %v418_v9 }
 0x2ec   :  { %427 = vsyncpa [#allocation7], 1 }

</bundles_post_ra>
